<compile_context>
chip_gen: v5e
topology: v5e:2x2
jax: 0.10.0
libtpu: 0.0.40
codegen_flags: <defaults>
</compile_context>

<pallas_src>
import math

import jax
import jax.numpy as jnp
from jax.experimental import pallas as pl
from jax.experimental.pallas import tpu as pltpu


def _make_kernel(tb: int, eps: float):
    def kernel(x_ref, fr_ref, fi_ref, ar_ref, ai_ref, wr_ref, wi_ref, g_ref,
               o_ref):
        # x_ref : (tb, S, H)        input tile (tb batch rows)
        # fr/fi : (Nf, S)           Re/Im of ortho rfft matrix
        # ar/ai : (S, Nf)           real matrices s.t. irfft(Yr+iYi) = ar@Yr + ai@Yi
        # wr/wi : (Nf, H)           Re/Im of the learned complex filter weight
        # g     : (1, H)            T5LayerNorm weight
        fr = fr_ref[...]
        fi = fi_ref[...]
        ar = ar_ref[...]
        ai = ai_ref[...]
        wr = wr_ref[...]
        wi = wi_ref[...]
        g = g_ref[...]                       # (1, H), broadcasts over rows

        for t in range(tb):                  # static unroll over the batch tile
            x = x_ref[t]                     # (S, H)

            # rfft along the sequence axis (ortho norm folded into fr/fi).
            xr = jnp.dot(fr, x, preferred_element_type=jnp.float32)   # (Nf, H)
            xi = jnp.dot(fi, x, preferred_element_type=jnp.float32)   # (Nf, H)

            # complex elementwise filter: (xr + i xi) * (wr + i wi)
            yr = xr * wr - xi * wi
            yi = xr * wi + xi * wr

            # irfft back to the sequence domain.
            y = (jnp.dot(ar, yr, preferred_element_type=jnp.float32) +
                 jnp.dot(ai, yi, preferred_element_type=jnp.float32))  # (S, H)

            # TODO(synk): out_dropout is identity in eval/inference mode;
            # training-mode dropout (pltpu.prng_random_bits mask) not emitted.

            # residual + T5LayerNorm (RMS norm, no mean subtraction, no bias).
            h = y + x
            var = jnp.mean(h * h, axis=-1, keepdims=True)
            o_ref[t] = (h * jax.lax.rsqrt(var + eps) * g).astype(o_ref.dtype)

    return kernel


def filter_layer(x, complex_weight_seq, ln_weight, *, eps=1e-12, tb=4):
    """Fused FilterLayer forward.

    x                  : (B, S, H) float32
    complex_weight_seq : (1, max_seq_length//2 + 1, H, 2) float32
                         (last dim = [real, imag], as in torch.view_as_complex)
    ln_weight          : (H,) float32  -- T5LayerNorm weight (ones at init)
    """
    B, S, H = x.shape
    Nf = S // 2 + 1
    assert complex_weight_seq.shape[1] >= Nf, "weight has too few frequencies"

    f32 = jnp.float32

    # Slice the filter to the frequencies actually used (weight[:, :Nf, :]).
    wr = complex_weight_seq[0, :Nf, :, 0].astype(f32)   # (Nf, H)
    wi = complex_weight_seq[0, :Nf, :, 1].astype(f32)   # (Nf, H)

    # Build real matrices for the ortho rfft / irfft along the seq axis by
    # transforming identity matrices; this folds the 1/sqrt(S) normalization
    # and reproduces jnp.fft's exact conventions.
    F = jnp.fft.rfft(jnp.eye(S, dtype=f32), axis=0, norm="ortho")    # (Nf, S) c64
    fr = jnp.real(F).astype(f32)
    fi = jnp.imag(F).astype(f32)
    eye_f = jnp.eye(Nf, dtype=jnp.complex64)
    ar = jnp.fft.irfft(eye_f, n=S, axis=0, norm="ortho").astype(f32)        # (S, Nf)
    ai = jnp.fft.irfft(1j * eye_f, n=S, axis=0, norm="ortho").astype(f32)   # (S, Nf)

    g = ln_weight.reshape(1, H).astype(f32)

    # Batch tile: a few rows per grid step to amortize per-step overhead; pad
    # the batch instead of asserting divisibility (padded rows produce zeros).
    tb = max(1, min(int(tb), B))
    Bp = ((B + tb - 1) // tb) * tb
    x_in = jnp.pad(x, ((0, Bp - B), (0, 0), (0, 0))) if Bp != B else x
    grid = (Bp // tb,)

    # Explicit VMEM budget (double-buffered blocks + slack) and a cost hint.
    blk_bytes = 4 * (2 * tb * S * H            # x tile + out tile
                     + 2 * Nf * S + 2 * S * Nf  # fr, fi, ar, ai
                     + 2 * Nf * H + H)          # wr, wi, gamma
    vmem_limit = min(100 * 1024 * 1024,
                     max(4 * 1024 * 1024, 4 * blk_bytes + (2 << 20)))
    flops = 8 * Nf * S * H * Bp + 12 * Bp * S * H
    bytes_accessed = 4 * (2 * Bp * S * H + 2 * Nf * S + 2 * S * Nf
                          + 2 * Nf * H + H)
    cost = pl.CostEstimate(flops=flops, transcendentals=Bp * S,
                           bytes_accessed=bytes_accessed)

    out = pl.pallas_call(
        _make_kernel(tb, float(eps)),
        out_shape=jax.ShapeDtypeStruct((Bp, S, H), x.dtype),
        grid_spec=pltpu.PrefetchScalarGridSpec(
            num_scalar_prefetch=0,
            grid=grid,
            in_specs=[
                pl.BlockSpec((tb, S, H), lambda i: (i, 0, 0)),   # x tile
                pl.BlockSpec((Nf, S), lambda i: (0, 0)),         # fr
                pl.BlockSpec((Nf, S), lambda i: (0, 0)),         # fi
                pl.BlockSpec((S, Nf), lambda i: (0, 0)),         # ar
                pl.BlockSpec((S, Nf), lambda i: (0, 0)),         # ai
                pl.BlockSpec((Nf, H), lambda i: (0, 0)),         # wr
                pl.BlockSpec((Nf, H), lambda i: (0, 0)),         # wi
                pl.BlockSpec((1, H), lambda i: (0, 0)),          # gamma
            ],
            out_specs=pl.BlockSpec((tb, S, H), lambda i: (i, 0, 0)),
        ),
        compiler_params=pltpu.CompilerParams(
            dimension_semantics=("parallel",),
            vmem_limit_bytes=int(vmem_limit)),
        cost_estimate=cost,
    )(x_in, fr, fi, ar, ai, wr, wi, g)

    return out[:B] if Bp != B else out


def _reference(x, complex_weight_seq, ln_weight, eps=1e-12):
    """Pure-JAX reference mirroring the PyTorch forward (eval mode)."""
    B, S, H = x.shape
    Nf = S // 2 + 1
    Xf = jnp.fft.rfft(x, axis=1, norm="ortho")
    w = (complex_weight_seq[0, :Nf, :, 0]
         + 1j * complex_weight_seq[0, :Nf, :, 1])           # (Nf, H)
    y = jnp.fft.irfft(Xf * w[None], n=S, axis=1, norm="ortho")
    h = y + x
    var = jnp.mean(h * h, axis=-1, keepdims=True)
    return h * jax.lax.rsqrt(var + eps) * ln_weight


if __name__ == "__main__":
    # Small shapes consistent with the module: batch=2, seq=8, hidden=32,
    # max_seq_length=8 (=> Nf = 5 frequencies), title_length unused on the
    # executed forward path.
    B, S, H = 2, 8, 32
    max_seq_length = 8

    key = jax.random.PRNGKey(0)
    kx, kw = jax.random.split(key, 2)
    x = jax.random.normal(kx, (B, S, H), dtype=jnp.float32)
    complex_weight_seq = (
        jax.random.normal(kw, (1, max_seq_length // 2 + 1, H, 2),
                          dtype=jnp.float32) * 0.02)
    ln_weight = jnp.ones((H,), dtype=jnp.float32)   # T5LayerNorm init

    out = filter_layer(x, complex_weight_seq, ln_weight)
    out = jax.block_until_ready(out)

    ref = _reference(x, complex_weight_seq, ln_weight)
    assert out.shape == (B, S, H)
    max_err = float(jnp.max(jnp.abs(out - ref)))
    assert jnp.allclose(out, ref, atol=1e-3, rtol=1e-3), max_err

    print("KERNEL_OK")
</pallas_src>

<mosaic_0001>
module attributes {stable_mosaic.version = 11 : i64} {
  func.func @kernel(%arg0: i32, %arg1: memref<2x8x32xf32, #tpu.memory_space<vmem>>, %arg2: memref<5x8xf32, #tpu.memory_space<vmem>>, %arg3: memref<5x8xf32, #tpu.memory_space<vmem>>, %arg4: memref<8x5xf32, #tpu.memory_space<vmem>>, %arg5: memref<8x5xf32, #tpu.memory_space<vmem>>, %arg6: memref<5x32xf32, #tpu.memory_space<vmem>>, %arg7: memref<5x32xf32, #tpu.memory_space<vmem>>, %arg8: memref<1x32xf32, #tpu.memory_space<vmem>>, %arg9: memref<2x8x32xf32, #tpu.memory_space<vmem>>) attributes {dimension_semantics = [#tpu.dimension_semantics<parallel>], iteration_bounds = array<i64: 1>, scalar_prefetch = 0 : i64, scratch_operands = 0 : i64, tpu.core_type = #tpu.core_type<tc>, window_params = [{transform_indices = @transform_0, window_bounds = array<i64: 2, 8, 32>}, {pipeline_mode = #tpu.pipeline_mode<synchronous>, transform_indices = @transform_1, window_bounds = array<i64: 5, 8>}, {pipeline_mode = #tpu.pipeline_mode<synchronous>, transform_indices = @transform_2, window_bounds = array<i64: 5, 8>}, {pipeline_mode = #tpu.pipeline_mode<synchronous>, transform_indices = @transform_3, window_bounds = array<i64: 8, 5>}, {pipeline_mode = #tpu.pipeline_mode<synchronous>, transform_indices = @transform_4, window_bounds = array<i64: 8, 5>}, {pipeline_mode = #tpu.pipeline_mode<synchronous>, transform_indices = @transform_5, window_bounds = array<i64: 5, 32>}, {pipeline_mode = #tpu.pipeline_mode<synchronous>, transform_indices = @transform_6, window_bounds = array<i64: 5, 32>}, {pipeline_mode = #tpu.pipeline_mode<synchronous>, transform_indices = @transform_7, window_bounds = array<i64: 1, 32>}, {transform_indices = @transform_8, window_bounds = array<i64: 2, 8, 32>}]} {
    %c0 = arith.constant 0 : index
    %c0_0 = arith.constant 0 : index
    %0 = vector.load %arg2[%c0, %c0_0] : memref<5x8xf32, #tpu.memory_space<vmem>>, vector<5x8xf32>
    %c0_1 = arith.constant 0 : index
    %c0_2 = arith.constant 0 : index
    %1 = vector.load %arg3[%c0_1, %c0_2] : memref<5x8xf32, #tpu.memory_space<vmem>>, vector<5x8xf32>
    %c0_3 = arith.constant 0 : index
    %c0_4 = arith.constant 0 : index
    %2 = vector.load %arg4[%c0_3, %c0_4] : memref<8x5xf32, #tpu.memory_space<vmem>>, vector<8x5xf32>
    %c0_5 = arith.constant 0 : index
    %c0_6 = arith.constant 0 : index
    %3 = vector.load %arg5[%c0_5, %c0_6] : memref<8x5xf32, #tpu.memory_space<vmem>>, vector<8x5xf32>
    %c0_7 = arith.constant 0 : index
    %c0_8 = arith.constant 0 : index
    %4 = vector.load %arg6[%c0_7, %c0_8] : memref<5x32xf32, #tpu.memory_space<vmem>>, vector<5x32xf32>
    %c0_9 = arith.constant 0 : index
    %c0_10 = arith.constant 0 : index
    %5 = vector.load %arg7[%c0_9, %c0_10] : memref<5x32xf32, #tpu.memory_space<vmem>>, vector<5x32xf32>
    %c0_11 = arith.constant 0 : index
    %c0_12 = arith.constant 0 : index
    %6 = vector.load %arg8[%c0_11, %c0_12] : memref<1x32xf32, #tpu.memory_space<vmem>>, vector<1x32xf32>
    %c0_13 = arith.constant 0 : index
    %c0_14 = arith.constant 0 : index
    %c0_15 = arith.constant 0 : index
    %7 = vector.load %arg1[%c0_13, %c0_14, %c0_15] : memref<2x8x32xf32, #tpu.memory_space<vmem>>, vector<1x8x32xf32>
    %8 = vector.shape_cast %7 : vector<1x8x32xf32> to vector<8x32xf32>
    %cst = arith.constant dense<0.000000e+00> : vector<5x32xf32>
    %9 = tpu.matmul %0, %8, %cst {dimension_numbers = #tpu.dot_dimension_numbers<[1], [0], [0], [1], [0, 0, 1, 1], [], []>} : vector<5x8xf32>, vector<8x32xf32>, vector<5x32xf32> -> vector<5x32xf32>
    %cst_16 = arith.constant dense<0.000000e+00> : vector<5x32xf32>
    %10 = tpu.matmul %1, %8, %cst_16 {dimension_numbers = #tpu.dot_dimension_numbers<[1], [0], [0], [1], [0, 0, 1, 1], [], []>} : vector<5x8xf32>, vector<8x32xf32>, vector<5x32xf32> -> vector<5x32xf32>
    %11 = arith.mulf %9, %4 : vector<5x32xf32>
    %12 = arith.mulf %10, %5 : vector<5x32xf32>
    %13 = arith.subf %11, %12 : vector<5x32xf32>
    %14 = arith.mulf %9, %5 : vector<5x32xf32>
    %15 = arith.mulf %10, %4 : vector<5x32xf32>
    %16 = arith.addf %14, %15 : vector<5x32xf32>
    %cst_17 = arith.constant dense<0.000000e+00> : vector<8x32xf32>
    %17 = tpu.matmul %2, %13, %cst_17 {dimension_numbers = #tpu.dot_dimension_numbers<[1], [0], [0], [1], [0, 0, 1, 1], [], []>} : vector<8x5xf32>, vector<5x32xf32>, vector<8x32xf32> -> vector<8x32xf32>
    %cst_18 = arith.constant dense<0.000000e+00> : vector<8x32xf32>
    %18 = tpu.matmul %3, %16, %cst_18 {dimension_numbers = #tpu.dot_dimension_numbers<[1], [0], [0], [1], [0, 0, 1, 1], [], []>} : vector<8x5xf32>, vector<5x32xf32>, vector<8x32xf32> -> vector<8x32xf32>
    %19 = arith.addf %17, %18 : vector<8x32xf32>
    %20 = arith.addf %19, %8 : vector<8x32xf32>
    %21 = arith.mulf %20, %20 : vector<8x32xf32>
    %cst_19 = arith.constant dense<0.000000e+00> : vector<8xf32>
    %22 = vector.multi_reduction <add>, %21, %cst_19 [1] : vector<8x32xf32> to vector<8xf32>
    %23 = vector.shape_cast %22 : vector<8xf32> to vector<8x1xf32>
    %cst_20 = arith.constant 3.200000e+01 : f32
    %24 = vector.broadcast %cst_20 : f32 to vector<8x1xf32>
    %25 = arith.divf %23, %24 : vector<8x1xf32>
    %cst_21 = arith.constant 9.99999996E-13 : f32
    %26 = vector.broadcast %cst_21 : f32 to vector<8x1xf32>
    %27 = arith.addf %25, %26 : vector<8x1xf32>
    %28 = math.rsqrt %27 : vector<8x1xf32>
    %29 = vector.broadcast %28 : vector<8x1xf32> to vector<8x32xf32>
    %30 = arith.mulf %20, %29 : vector<8x32xf32>
    %31 = vector.broadcast %6 : vector<1x32xf32> to vector<8x32xf32>
    %32 = arith.mulf %30, %31 : vector<8x32xf32>
    %c0_22 = arith.constant 0 : index
    %c0_23 = arith.constant 0 : index
    %c0_24 = arith.constant 0 : index
    %33 = vector.load %arg9[%c0_22, %c0_23, %c0_24] : memref<2x8x32xf32, #tpu.memory_space<vmem>>, vector<1x8x32xf32>
    %34 = vector.shape_cast %33 : vector<1x8x32xf32> to vector<8x32xf32>
    %35 = vector.shape_cast %32 : vector<8x32xf32> to vector<1x8x32xf32>
    tpu.vector_store %arg9[%c0_22, %c0_23, %c0_24], %35 {strides = array<i32>} : memref<2x8x32xf32, #tpu.memory_space<vmem>>, vector<1x8x32xf32>,
    %c1 = arith.constant 1 : index
    %c0_25 = arith.constant 0 : index
    %c0_26 = arith.constant 0 : index
    %36 = vector.load %arg1[%c1, %c0_25, %c0_26] : memref<2x8x32xf32, #tpu.memory_space<vmem>>, vector<1x8x32xf32>
    %37 = vector.shape_cast %36 : vector<1x8x32xf32> to vector<8x32xf32>
    %cst_27 = arith.constant dense<0.000000e+00> : vector<5x32xf32>
    %38 = tpu.matmul %0, %37, %cst_27 {dimension_numbers = #tpu.dot_dimension_numbers<[1], [0], [0], [1], [0, 0, 1, 1], [], []>} : vector<5x8xf32>, vector<8x32xf32>, vector<5x32xf32> -> vector<5x32xf32>
    %cst_28 = arith.constant dense<0.000000e+00> : vector<5x32xf32>
    %39 = tpu.matmul %1, %37, %cst_28 {dimension_numbers = #tpu.dot_dimension_numbers<[1], [0], [0], [1], [0, 0, 1, 1], [], []>} : vector<5x8xf32>, vector<8x32xf32>, vector<5x32xf32> -> vector<5x32xf32>
    %40 = arith.mulf %38, %4 : vector<5x32xf32>
    %41 = arith.mulf %39, %5 : vector<5x32xf32>
    %42 = arith.subf %40, %41 : vector<5x32xf32>
    %43 = arith.mulf %38, %5 : vector<5x32xf32>
    %44 = arith.mulf %39, %4 : vector<5x32xf32>
    %45 = arith.addf %43, %44 : vector<5x32xf32>
    %cst_29 = arith.constant dense<0.000000e+00> : vector<8x32xf32>
    %46 = tpu.matmul %2, %42, %cst_29 {dimension_numbers = #tpu.dot_dimension_numbers<[1], [0], [0], [1], [0, 0, 1, 1], [], []>} : vector<8x5xf32>, vector<5x32xf32>, vector<8x32xf32> -> vector<8x32xf32>
    %cst_30 = arith.constant dense<0.000000e+00> : vector<8x32xf32>
    %47 = tpu.matmul %3, %45, %cst_30 {dimension_numbers = #tpu.dot_dimension_numbers<[1], [0], [0], [1], [0, 0, 1, 1], [], []>} : vector<8x5xf32>, vector<5x32xf32>, vector<8x32xf32> -> vector<8x32xf32>
    %48 = arith.addf %46, %47 : vector<8x32xf32>
    %49 = arith.addf %48, %37 : vector<8x32xf32>
    %50 = arith.mulf %49, %49 : vector<8x32xf32>
    %cst_31 = arith.constant dense<0.000000e+00> : vector<8xf32>
    %51 = vector.multi_reduction <add>, %50, %cst_31 [1] : vector<8x32xf32> to vector<8xf32>
    %52 = vector.shape_cast %51 : vector<8xf32> to vector<8x1xf32>
    %cst_32 = arith.constant 3.200000e+01 : f32
    %53 = vector.broadcast %cst_32 : f32 to vector<8x1xf32>
    %54 = arith.divf %52, %53 : vector<8x1xf32>
    %cst_33 = arith.constant 9.99999996E-13 : f32
    %55 = vector.broadcast %cst_33 : f32 to vector<8x1xf32>
    %56 = arith.addf %54, %55 : vector<8x1xf32>
    %57 = math.rsqrt %56 : vector<8x1xf32>
    %58 = vector.broadcast %57 : vector<8x1xf32> to vector<8x32xf32>
    %59 = arith.mulf %49, %58 : vector<8x32xf32>
    %60 = vector.broadcast %6 : vector<1x32xf32> to vector<8x32xf32>
    %61 = arith.mulf %59, %60 : vector<8x32xf32>
    %c1_34 = arith.constant 1 : index
    %c0_35 = arith.constant 0 : index
    %c0_36 = arith.constant 0 : index
    %62 = vector.load %arg9[%c1_34, %c0_35, %c0_36] : memref<2x8x32xf32, #tpu.memory_space<vmem>>, vector<1x8x32xf32>
    %63 = vector.shape_cast %62 : vector<1x8x32xf32> to vector<8x32xf32>
    %64 = vector.shape_cast %61 : vector<8x32xf32> to vector<1x8x32xf32>
    tpu.vector_store %arg9[%c1_34, %c0_35, %c0_36], %64 {strides = array<i32>} : memref<2x8x32xf32, #tpu.memory_space<vmem>>, vector<1x8x32xf32>,
    return
  }
  func.func @transform_0(%arg0: i32) -> (i32, i32, i32) {
    %c0_i32 = arith.constant 0 : i32
    %c0_i32_0 = arith.constant 0 : i32
    %c0_i32_1 = arith.constant 0 : i32
    return %arg0, %c0_i32, %c0_i32_0 : i32, i32, i32
  }
  func.func @transform_1(%arg0: i32) -> (i32, i32) {
    %c0_i32 = arith.constant 0 : i32
    %c0_i32_0 = arith.constant 0 : i32
    %c0_i32_1 = arith.constant 0 : i32
    return %c0_i32, %c0_i32_0 : i32, i32
  }
  func.func @transform_2(%arg0: i32) -> (i32, i32) {
    %c0_i32 = arith.constant 0 : i32
    %c0_i32_0 = arith.constant 0 : i32
    %c0_i32_1 = arith.constant 0 : i32
    return %c0_i32, %c0_i32_0 : i32, i32
  }
  func.func @transform_3(%arg0: i32) -> (i32, i32) {
    %c0_i32 = arith.constant 0 : i32
    %c0_i32_0 = arith.constant 0 : i32
    %c0_i32_1 = arith.constant 0 : i32
    return %c0_i32, %c0_i32_0 : i32, i32
  }
  func.func @transform_4(%arg0: i32) -> (i32, i32) {
    %c0_i32 = arith.constant 0 : i32
    %c0_i32_0 = arith.constant 0 : i32
    %c0_i32_1 = arith.constant 0 : i32
    return %c0_i32, %c0_i32_0 : i32, i32
  }
  func.func @transform_5(%arg0: i32) -> (i32, i32) {
    %c0_i32 = arith.constant 0 : i32
    %c0_i32_0 = arith.constant 0 : i32
    %c0_i32_1 = arith.constant 0 : i32
    return %c0_i32, %c0_i32_0 : i32, i32
  }
  func.func @transform_6(%arg0: i32) -> (i32, i32) {
    %c0_i32 = arith.constant 0 : i32
    %c0_i32_0 = arith.constant 0 : i32
    %c0_i32_1 = arith.constant 0 : i32
    return %c0_i32, %c0_i32_0 : i32, i32
  }
  func.func @transform_7(%arg0: i32) -> (i32, i32) {
    %c0_i32 = arith.constant 0 : i32
    %c0_i32_0 = arith.constant 0 : i32
    %c0_i32_1 = arith.constant 0 : i32
    return %c0_i32, %c0_i32_0 : i32, i32
  }
  func.func @transform_8(%arg0: i32) -> (i32, i32, i32) {
    %c0_i32 = arith.constant 0 : i32
    %c0_i32_0 = arith.constant 0 : i32
    %c0_i32_1 = arith.constant 0 : i32
    return %arg0, %c0_i32, %c0_i32_0 : i32, i32, i32
  }
}

</mosaic_0001>

<bundles_post_ra>
// kernel: tpu_custom_call.1
= control target key start
LH: loop header
LB: loop body
LE: loop exit
PB: predicated region body
PF: predicated region fallthrough
CT: control target
= control target key end

     0   :  { %13 = vsyncpa [#allocation3], 0  ;;  %s743_s0 = inlined_call_operand.hbm [shape: f32[2,8,32], index: 0, kind: input, shape index: {}]   ;;  %s744_s1 = inlined_call_operand.hbm [shape: f32[5,8], index: 1, kind: input, shape index: {}]   ;;  %s745_s2 = inlined_call_operand.hbm [shape: f32[5,8], index: 2, kind: input, shape index: {}]   ;;  %s746_s3 = inlined_call_operand.hbm [shape: f32[8,5], index: 3, kind: input, shape index: {}]   ;;  %s747_s4 = inlined_call_operand.hbm [shape: f32[8,5], index: 4, kind: input, shape index: {}]   ;;  %s748_s5 = inlined_call_operand.hbm [shape: f32[5,32], index: 5, kind: input, shape index: {}]   ;;  %s749_s6 = inlined_call_operand.hbm [shape: f32[5,32], index: 6, kind: input, shape index: {}]   ;;  %s750_s7 = inlined_call_operand.vmem [shape: f32[1,32], index: 7, kind: input, shape index: {}]   ;;  %s751_s8 = inlined_call_operand.hbm [shape: f32[2,8,32], index: 8, kind: output, shape index: {}]  }
   0x1   :  { %14 = vsyncpa [#allocation6], 0 }
   0x2   :  { %15 = vsyncpa [#allocation9], 0 }
   0x3   :  { %16 = vsyncpa [#allocation12], 0  ;;  %s36_s29 = sshll.u32 %s744_s1, 4  ;;  %s37_s29 = int_to_ptr.hbm [resolvable:$true] %s36_s29 }
   0x4   :  { %17 = vsyncpa [#allocation4], 0  ;;  %s642_s30 = smov [#allocation5]   ;;  %s58_s12 = sshll.u32 %s746_s3, 4  ;;  %s59_s12 = int_to_ptr.hbm [resolvable:$true] %s58_s12 }
   0x5   :  { %s38_s9 = sshll.u32 %s642_s30, 4  ;;  %s643_s13 = smov [#allocation8]   ;;  %s39_s9 = int_to_ptr.vmem [resolvable:$true] %s38_s9 }
   0x6   :  { %41 = dma.hbm_to_vmem [thread:$0]  %s37_s29, 128, %s39_s9, [#allocation6]  }
   0x7   :  { %s60_s14 = sshll.u32 %s643_s13, 4  ;;  %s80_s17 = sshll.u32 %s748_s5, 4  ;;  %s61_s14 = int_to_ptr.vmem [resolvable:$true] %s60_s14  ;;  %s81_s17 = int_to_ptr.hbm [resolvable:$true] %s80_s17 }
   0x8   :  { %63 = dma.hbm_to_vmem [thread:$0]  %s59_s12, 128, %s61_s14, [#allocation9]  }
   0x9   :  { %s22_s19 = sshll.u32 %s743_s0, 4  ;;  %s644_s20 = smov [#allocation11]   ;;  %s23_s19 = int_to_ptr.hbm [resolvable:$true] %s22_s19 }
   0xa   :  { %s82_s21 = sshll.u32 %s644_s20, 4  ;;  %s645_s3 = smov [#allocation2]   ;;  %s83_s21 = int_to_ptr.vmem [resolvable:$true] %s82_s21 }
   0xb   :  { %85 = dma.hbm_to_vmem [thread:$0]  %s81_s17, 128, %s83_s21, [#allocation12]  }
   0xc   :  { %s24_s22 = sshll.u32 %s645_s3, 4  ;;  %s646_s23 = smov 128   ;;  %s25_s22 = int_to_ptr.vmem [resolvable:$true] %s24_s22 }
   0xd   :  { %s647_s24 = smov 8   ;;  %s47_s26 = sshll.u32 %s745_s2, 4  ;;  %s48_s26 = int_to_ptr.hbm [resolvable:$true] %s47_s26 }
   0xe   :  { %30 = dma.hbm_to_vmem [thread:$0]  %s23_s19, 256, %s25_s22, [#allocation3], %s646_s23, %s646_s23, %s647_s24  }
   0xf   :  { %s648_s0 = smov [#allocation7]   ;;  %s69_s30 = sshll.u32 %s747_s4, 4  ;;  %s70_s30 = int_to_ptr.hbm [resolvable:$true] %s69_s30 }
  0x10   :  { %s49_s27 = sshll.u32 %s648_s0, 4  ;;  %s649_s9 = smov [#allocation10]   ;;  %s50_s27 = int_to_ptr.vmem [resolvable:$true] %s49_s27 }
  0x11   :  { %52 = dma.hbm_to_vmem [thread:$0]  %s48_s26, 128, %s50_s27, [#allocation6]  }
  0x12   :  { %s71_s10 = sshll.u32 %s649_s9, 4  ;;  %s91_s13 = sshll.u32 %s749_s6, 4  ;;  %s72_s10 = int_to_ptr.vmem [resolvable:$true] %s71_s10  ;;  %s92_s13 = int_to_ptr.hbm [resolvable:$true] %s91_s13 }
  0x13   :  { %74 = dma.hbm_to_vmem [thread:$0]  %s70_s30, 128, %s72_s10, [#allocation9]  }
  0x14   :  { %s650_s2 = smov [#allocation13]  }
  0x15   :  { %s93_s14 = sshll.u32 %s650_s2, 4  ;;  %s94_s14 = int_to_ptr.vmem [resolvable:$true] %s93_s14 }
  0x16   :  { %96 = dma.hbm_to_vmem [thread:$0]  %s92_s13, 128, %s94_s14, [#allocation12]  }
  0x17   :  { %632 = dma.done.wait [#allocation3], 256  }
  0x18   :  { %633 = vsyncadd [#allocation3], 4294967040 }
  0x19   :  { %634 = dma.done.wait [#allocation6], 256  }
  0x1a   :  { %635 = vsyncadd [#allocation6], 4294967040 }
  0x1b   :  { %636 = dma.done.wait [#allocation9], 256  }
  0x1c   :  { %637 = vsyncadd [#allocation9], 4294967040 }
  0x1d   :  { %638 = dma.done.wait [#allocation12], 256  }
  0x1e   :  { %639 = vsyncadd [#allocation12], 4294967040  ;;  %vm135_vm0 = vcmask 64512   ;;  %v134_v0 = vld [vmem:[#allocation2] sm:$0xff]  ;;  %v127_v1 = vld [vmem:[#allocation5] sm:$0x1f] }
  0x1f   :  { %v128_v2 = vld [vmem:[#allocation7] sm:$0x1f]  ;;  %154 = vmatpush.msra.mxu0 %v134_v0  ;;  %177 = vmatpush.msra.mxu1 %v134_v0  ;;  %v274_v3 = vld [vmem:[#allocation2 + $0x8] sm:$0xff]  ;;  %v131_v4 = vld [vmem:[#allocation11] sm:$0x1f]  ;;  %vm192_vm1 = vcmask 1044480  }
  0x20   :  { %410 = vmatmul.msk.f32.vlgmr.msra.gmra.mxu0 %vm135_vm0, %v127_v1  ;;  %411 = vmatmul.msk.f32.vlgmr.msra.gmra.mxu1 %vm135_vm0, %v128_v2  ;;  %v132_v5 = vld [vmem:[#allocation13] sm:$0x1f]  ;;  %v130_v14 = vld [vmem:[#allocation10] sm:$0xff]  ;;  %vm188_vm2 = vcmask 39936   ;;  %v129_v15 = vld [vmem:[#allocation8] sm:$0xff]  ;;  %vm244_vm3 = vcmask 261120  }
  0x21   :  { %290 = vmatpush.msrb.mxu0 %v274_v3  ;;  %310 = vmatpush.msrb.mxu1 %v274_v3  ;;  %v651_v36 = vmov 32.0   ;;  %v433_v57 = vld [vmem:[%s750_s7] ss:$0 sm:$0xff]  ;;  %s652_s15 = smov [#allocation14]   ;;  %s394_s18 = sshll.u32 %s751_s8, 4  ;;  %s395_s18 = int_to_ptr.hbm [resolvable:$true] %s394_s18 }
  0x22   :  { %434 = vrcp.f32 %v651_v36  ;;  %s392_s16 = sshll.u32 %s652_s15, 4  ;;  %s393_s16 = int_to_ptr.vmem [resolvable:$true] %s392_s16 }
  0x28   :  { %416 = vmatmul.msk.f32.vlgmr.msrb.gmra.mxu0 %vm135_vm0, %v127_v1  ;;  %417 = vmatmul.msk.f32.vlgmr.msrb.gmra.mxu1 %vm135_vm0, %v128_v2  ;;  %v435_v37 = vpop.eup %434 }
  0x29   :  { %v249_v38 = vmul.f32 32.0, %v435_v37  ;;  %vm253_vm4 = vweird.f32 %v435_v37 }
  0x2b   :  { %v250_v39 = vsub.f32 1.0, %v249_v38 }
  0x2d   :  { %v251_v40 = vmul.f32 %v435_v37, %v250_v39 }
  0x2f   :  { %v252_v41 = vadd.f32 %v435_v37, %v251_v40 }
  0x31   :  { %v254_v42 = vsel %vm253_vm4, %v435_v37, %v252_v41 }
  0x9d   :  { %v156_v6 = vpop.f32.mrf.mxu0  ;;  %v179_v7 = vpop.f32.mrf.mxu1 }
  0x9e   :  { %v182_v8 = vmul.f32 %v156_v6, %v131_v4  ;;  %v185_v9 = vmul.f32 %v156_v6, %v132_v5  ;;  %v183_v10 = vmul.f32 %v179_v7, %v132_v5  ;;  %v186_v11 = vmul.f32 %v179_v7, %v131_v4 }
  0xa0   :  { %v187_v12 = vadd.f32 %v186_v11, %v185_v9  ;;  %v184_v13 = vsub.f32 %v182_v8, %v183_v10 }
  0xa2   :  { %412 = vmatpush.msk.msra.mxu2 %vm192_vm1, %v187_v12  ;;  %414 = vmatpush.msk.msra.mxu3 %vm192_vm1, %v184_v13 }
  0xa3   :  { %413 = vmatmul.msk.f32.vlgmr.msra.gmra.mxu2 %vm188_vm2, %v130_v14  ;;  %415 = vmatmul.msk.f32.vlgmr.msra.gmra.mxu3 %vm188_vm2, %v129_v15 }
  0xa5   :  { %v292_v16 = vpop.f32.mrf.mxu0  ;;  %v312_v17 = vpop.f32.mrf.mxu1 }
  0xa6   :  { %v315_v18 = vmul.f32 %v292_v16, %v131_v4  ;;  %v318_v19 = vmul.f32 %v292_v16, %v132_v5  ;;  %v316_v20 = vmul.f32 %v312_v17, %v132_v5  ;;  %v319_v21 = vmul.f32 %v312_v17, %v131_v4 }
  0xa8   :  { %v317_v22 = vsub.f32 %v315_v18, %v316_v20  ;;  %v320_v23 = vadd.f32 %v319_v21, %v318_v19 }
  0xaa   :  { %418 = vmatpush.msk.msrb.mxu2 %vm192_vm1, %v320_v23  ;;  %420 = vmatpush.msk.msrb.mxu3 %vm192_vm1, %v317_v22 }
  0xab   :  { %419 = vmatmul.msk.f32.vlgmr.msrb.gmra.mxu2 %vm188_vm2, %v130_v14  ;;  %421 = vmatmul.msk.f32.vlgmr.msrb.gmra.mxu3 %vm188_vm2, %v129_v15 }
 0x126   :  { %v213_v24 = vpop.f32.mrf.mxu2  ;;  %v239_v25 = vpop.f32.mrf.mxu3 }
 0x127   :  { %v240_v26 = vadd.f32 %v239_v25, %v213_v24 }
 0x129   :  { %v242_v27 = vadd.f32 %v240_v26, %v134_v0 }
 0x12b   :  { %v243_v28 = vmul.f32 %v242_v27, %v242_v27 }
 0x12d   :  { %v245_v29 = vsel %vm244_vm3, %v243_v28, 0.0 }
 0x12e   :  { %v341_v30 = vpop.f32.mrf.mxu2  ;;  %v364_v31 = vpop.f32.mrf.mxu3  ;;  %246 = vadd.xlane.f32.xlu0 %v245_v29 }
 0x12f   :  { %v365_v32 = vadd.f32 %v364_v31, %v341_v30 }
 0x131   :  { %v367_v33 = vadd.f32 %v365_v32, %v274_v3 }
 0x133   :  { %v368_v34 = vmul.f32 %v367_v33, %v367_v33 }
 0x135   :  { %v369_v35 = vsel %vm244_vm3, %v368_v34, 0.0 }
 0x136   :  { %370 = vadd.xlane.f32.xlu0 %v369_v35 }
 0x1a1   :  { %v247_v43 = vpop.xlane.xlu0 %246 }
 0x1a2   :  { %v255_v44 = vmul.f32 %v254_v42, %v247_v43 }
 0x1a4   :  { %v256_v45 = vadd.f32 1e-12, %v255_v44 }
 0x1a6   :  { %436 = vrsqrt.f32 %v256_v45  ;;  %vm263_vm6 = vweird.f32 %v256_v45 }
 0x1a9   :  { %v371_v46 = vpop.xlane.xlu0 %370 }
 0x1aa   :  { %v372_v47 = vmul.f32 %v371_v46, %v254_v42 }
 0x1ac   :  { %v437_v48 = vpop.eup %436  ;;  %v373_v49 = vadd.f32 1e-12, %v372_v47 }
 0x1ad   :  { %v258_v50 = vmul.f32 %v437_v48, %v256_v45  ;;  %vm264_vm5 = vweird.f32 %v437_v48 }
 0x1ae   :  { %438 = vrsqrt.f32 %v373_v49  ;;  %vm265_vm7 = vmor %vm263_vm6, %vm264_vm5  ;;  %vm380_vm9 = vweird.f32 %v373_v49 }
 0x1af   :  { %v259_v51 = vmul.f32 %v437_v48, %v258_v50 }
 0x1b1   :  { %v260_v52 = vmul.f32 0.5, %v259_v51 }
 0x1b3   :  { %v261_v53 = vsub.f32 1.5, %v260_v52 }
 0x1b4   :  { %v439_v54 = vpop.eup %438 }
 0x1b5   :  { %v262_v55 = vmul.f32 %v437_v48, %v261_v53  ;;  %v375_v56 = vmul.f32 %v439_v54, %v373_v49  ;;  %vm381_vm8 = vweird.f32 %v439_v54 }
 0x1b6   :  { %vm382_vm10 = vmor %vm380_vm9, %vm381_vm8 }
 0x1b7   :  { %v266_v58 = vsel %vm265_vm7, %v437_v48, %v262_v55  ;;  %v376_v59 = vmul.f32 %v439_v54, %v375_v56 }
 0x1b8   :  { %v267_v60 = vmul.f32 %v266_v58, %v242_v27 }
 0x1b9   :  { %v377_v61 = vmul.f32 0.5, %v376_v59 }
 0x1ba   :  { %v271_v62 = vmul.f32 %v433_v57, %v267_v60 }
 0x1bb   :  { %v378_v63 = vsub.f32 1.5, %v377_v61 }
 0x1bc   :  { %272 = vst.msk [vmem:[#allocation14] sm:$0xff] %vm244_vm3, %v271_v62 }
 0x1bd   :  { %v379_v0 = vmul.f32 %v439_v54, %v378_v63 }
 0x1bf   :  { %v383_v1 = vsel %vm382_vm10, %v439_v54, %v379_v0 }
 0x1c0   :  { %v384_v2 = vmul.f32 %v383_v1, %v367_v33 }
 0x1c2   :  { %v385_v3 = vmul.f32 %v433_v57, %v384_v2 }
 0x1c4   :  { %387 = vst.msk [vmem:[#allocation14 + $0x8] sm:$0xff] %vm244_vm3, %v385_v3 }
 0x1c5   :  { %400 = dma.vmem_to_hbm [thread:$0]  %s393_s16, 256, %s395_s18, [#allocation4], %s646_s23, %s646_s23, %s647_s24  }
 0x1c6   :  { %640 = dma.done.wait [#allocation4], 256  }
 0x1c7   :  { %641 = vsyncadd [#allocation4], 4294967040 }
 0x1c8   :  { %405 = vsyncpa [#allocation3], 1 }
 0x1c9   :  { %406 = vsyncpa [#allocation6], 1 }
 0x1ca   :  { %407 = vsyncpa [#allocation9], 1 }
 0x1cb   :  { %408 = vsyncpa [#allocation12], 1 }
 0x1cc   :  { %409 = vsyncpa [#allocation4], 1 }

</bundles_post_ra>
